<compile_context>
chip_gen: v5e
topology: v5e:2x2
jax: 0.10.0
libtpu: 0.0.40
codegen_flags: <defaults>
</compile_context>

<pallas_src>
import functools

import jax
import jax.numpy as jnp
from jax.experimental import pallas as pl
from jax.experimental.pallas import tpu as pltpu


def _round_up(n, m):
    return ((n + m - 1) // m) * m


def _make_kernel(lorder, lstride, tile_t, lc):
    """Fused (linear -> FSMN causal conv -> affine -> relu) kernel body."""

    def kernel(x_ref, cache_ref, w1t_ref, wc_ref, w2t_ref, b_ref,
               o_ref, carry_ref, concat_ref):
        j = pl.program_id(1)

        # First time-tile of this batch row: seed left-context carry from cache.
        @pl.when(j == 0)
        def _():
            carry_ref[...] = cache_ref[0].astype(carry_ref.dtype)

        # 1) LinearTransform (bias-free): x1 = x @ W1^T   (MXU, f32 accumulate).
        x1 = jnp.dot(x_ref[0], w1t_ref[...], preferred_element_type=jnp.float32)

        # 2) FSMN block: depthwise causal conv over time with streaming cache.
        #    concat = [carry (lc frames) ; x1 (tile_t frames)]
        concat_ref[0:lc, :] = carry_ref[...]
        concat_ref[lc:lc + tile_t, :] = x1
        # Carry the last `lc` frames of concat into the next time-tile.
        carry_ref[...] = concat_ref[tile_t:tile_t + lc, :]

        wc = wc_ref[...]                       # (lorder, Dp_p), f32
        acc = x1                               # residual: out = x1 + y_left
        for k in range(lorder):                # static unroll; lorder is small
            s = k * lstride
            acc = acc + concat_ref[s:s + tile_t, :] * wc[k:k + 1, :]

        # 3) AffineTransform (+bias)  and  4) ReLU.
        y = jnp.dot(acc.astype(w2t_ref.dtype), w2t_ref[...],
                    preferred_element_type=jnp.float32) + b_ref[...]
        o_ref[0] = jnp.maximum(y, 0.0).astype(o_ref.dtype)

    return kernel


def prepare_params(w_linear, w_conv, w_affine, b_affine, dtype=jnp.float32):
    """Pad/transpose weights once, outside the hot per-chunk call.

    w_linear: (Dp, Din)          nn.Linear(Din, Dp, bias=False)
    w_conv:   (Dp, 1, lorder, 1) depthwise Conv2d weight (groups=Dp, no bias)
    w_affine: (Dout, Dp)         nn.Linear(Dp, Dout)
    b_affine: (Dout,)
    dtype:    streaming dtype for the two matmul weights (f32 or bf16).
    """
    Dp, Din = w_linear.shape
    lorder = w_conv.shape[2]
    Dout = w_affine.shape[0]
    Din_p, Dp_p, Dout_p = (_round_up(Din, 128), _round_up(Dp, 128),
                           _round_up(Dout, 128))
    w1t = jnp.zeros((Din_p, Dp_p), dtype).at[:Din, :Dp].set(
        jnp.asarray(w_linear).T.astype(dtype))
    wc = jnp.zeros((lorder, Dp_p), jnp.float32).at[:, :Dp].set(
        jnp.asarray(w_conv).reshape(Dp, lorder).T.astype(jnp.float32))
    w2t = jnp.zeros((Dp_p, Dout_p), dtype).at[:Dp, :Dout].set(
        jnp.asarray(w_affine).T.astype(dtype))
    b = jnp.zeros((1, Dout_p), jnp.float32).at[0, :Dout].set(
        jnp.asarray(b_affine).astype(jnp.float32))
    return {"w1t": w1t, "wc": wc, "w2t": w2t, "b": b}


@functools.partial(jax.jit, static_argnames=("lstride", "dout", "tile_t"))
def basic_block_forward(x, in_cache, params, *, lstride=1, dout=None, tile_t=None):
    """Fused forward of BasicBlock_export.

    x:        (B, T, Din)
    in_cache: (B, Dp, (lorder-1)*lstride, 1)   FSMN streaming cache
    returns (y, out_cache): y is (B, T, Dout), out_cache matches in_cache shape.
    """
    w1t, wc, w2t, b = params["w1t"], params["wc"], params["w2t"], params["b"]
    B, T, Din = x.shape
    _, Dp, Lc, _ = in_cache.shape
    lorder = wc.shape[0]
    Din_p, Dp_p = w1t.shape
    Dout_p = w2t.shape[1]
    if dout is None:
        dout = Dout_p
    assert Lc == (lorder - 1) * lstride and Lc >= 1
    assert Din <= Din_p and Dp <= Dp_p and dout <= Dout_p

    # Time tiling: balanced tiles, as large as possible up to 512 rows.
    if tile_t is None:
        n_t = pl.cdiv(T, 512)
        tile_t = T if n_t == 1 else _round_up(pl.cdiv(T, n_t), 8)
    n_t = pl.cdiv(T, tile_t)
    T_pad = n_t * tile_t
    assert n_t == 1 or tile_t % 8 == 0

    io_dtype = w1t.dtype
    x_p = jnp.zeros((B, T_pad, Din_p), io_dtype).at[:, :T, :Din].set(
        x.astype(io_dtype))
    cache_tm = jnp.transpose(in_cache[:, :, :, 0], (0, 2, 1))        # (B, Lc, Dp)
    cache_p = jnp.zeros((B, Lc, Dp_p), jnp.float32).at[:, :, :Dp].set(
        cache_tm.astype(jnp.float32))

    kernel = _make_kernel(lorder, lstride, tile_t, Lc)

    isz = jnp.dtype(io_dtype).itemsize
    cost = pl.CostEstimate(
        flops=2 * B * T_pad * (Din_p * Dp_p + Dp_p * Dout_p + lorder * Dp_p),
        transcendentals=0,
        bytes_accessed=(B * T_pad * Din_p * isz + B * T_pad * Dout_p * 4
                        + (Din_p * Dp_p + Dp_p * Dout_p) * isz
                        + B * Lc * Dp_p * 4 + lorder * Dp_p * 4 + Dout_p * 4),
    )

    out_p = pl.pallas_call(
        kernel,
        out_shape=jax.ShapeDtypeStruct((B, T_pad, Dout_p), jnp.float32),
        grid_spec=pltpu.PrefetchScalarGridSpec(
            num_scalar_prefetch=0,
            grid=(B, n_t),
            in_specs=[
                pl.BlockSpec((1, tile_t, Din_p), lambda bi, j: (bi, j, 0)),  # x tile
                pl.BlockSpec((1, Lc, Dp_p), lambda bi, j: (bi, 0, 0)),       # cache
                pl.BlockSpec((Din_p, Dp_p), lambda bi, j: (0, 0)),           # W1^T
                pl.BlockSpec((lorder, Dp_p), lambda bi, j: (0, 0)),          # conv w
                pl.BlockSpec((Dp_p, Dout_p), lambda bi, j: (0, 0)),          # W2^T
                pl.BlockSpec((1, Dout_p), lambda bi, j: (0, 0)),             # bias
            ],
            out_specs=pl.BlockSpec((1, tile_t, Dout_p), lambda bi, j: (bi, j, 0)),
            scratch_shapes=[
                pltpu.VMEM((Lc, Dp_p), jnp.float32),            # carried context
                pltpu.VMEM((Lc + tile_t, Dp_p), jnp.float32),   # [carry ; x1]
            ],
        ),
        compiler_params=pltpu.CompilerParams(
            dimension_semantics=("parallel", "arbitrary"),
        ),
        cost_estimate=cost,
    )(x_p, cache_p, w1t, wc, w2t, b)

    y = out_p[:, :T, :dout].astype(x.dtype)

    # Streaming cache update = last Lc frames of cat(cache, linear(x)).  Computed
    # on the exact (unpadded) tail in plain XLA so time padding never leaks into
    # the state; recomputing the Lc-frame tail of the linear is negligible work.
    tail = min(Lc, T)
    x1_tail = jnp.einsum("btk,kp->btp",
                         x[:, T - tail:, :].astype(jnp.float32),
                         w1t[:Din, :Dp].astype(jnp.float32))
    new_cache_tm = jnp.concatenate(
        [cache_tm.astype(jnp.float32), x1_tail], axis=1)[:, -Lc:, :]
    out_cache = jnp.transpose(new_cache_tm, (0, 2, 1))[:, :, :, None]
    return y, out_cache.astype(in_cache.dtype)


def reference_forward(x, in_cache, w_linear, w_conv, w_affine, b_affine, lstride=1):
    """Pure-JAX reference mirroring the PyTorch module (rorder = 0).
    Also usable as an XLA fallback for tiny chunks where kernel launch overhead
    dominates (not gated here so the demo exercises the Pallas path)."""
    B, T, _ = x.shape
    Dp = w_linear.shape[0]
    lorder = w_conv.shape[2]
    Lc = (lorder - 1) * lstride
    x1 = jnp.einsum("btk,pk->btp", x, w_linear)                   # Linear, no bias
    cache_tm = jnp.transpose(in_cache[:, :, :, 0], (0, 2, 1))     # (B, Lc, Dp)
    concat = jnp.concatenate([cache_tm, x1], axis=1)              # (B, Lc+T, Dp)
    out_cache = jnp.transpose(concat[:, -Lc:, :], (0, 2, 1))[:, :, :, None]
    w = jnp.reshape(w_conv, (Dp, lorder))
    y_left = jnp.zeros_like(x1)
    for k in range(lorder):
        y_left = y_left + concat[:, k * lstride:k * lstride + T, :] * w[:, k][None, None, :]
    out = x1 + y_left                                             # residual
    y = jnp.einsum("btp,np->btn", out, w_affine) + b_affine       # Affine
    return jnp.maximum(y, 0.0), out_cache                         # ReLU


if __name__ == "__main__":
    # Small deterministic example consistent with the module's forward:
    # input (B, T, linear_dim), cache (B, proj_dim, (lorder-1)*lstride, 1).
    B, T = 2, 8
    linear_dim, proj_dim = 32, 16
    lorder, lstride = 4, 1
    Lc = (lorder - 1) * lstride

    key = jax.random.PRNGKey(0)
    k1, k2, k3, k4, k5, k6 = jax.random.split(key, 6)
    x = jax.random.normal(k1, (B, T, linear_dim), jnp.float32)
    in_cache = jax.random.normal(k2, (B, proj_dim, Lc, 1), jnp.float32) * 0.1
    w_linear = jax.random.normal(k3, (proj_dim, linear_dim), jnp.float32) * 0.1
    w_conv = jax.random.normal(k4, (proj_dim, 1, lorder, 1), jnp.float32) * 0.1
    w_affine = jax.random.normal(k5, (linear_dim, proj_dim), jnp.float32) * 0.1
    b_affine = jax.random.normal(k6, (linear_dim,), jnp.float32) * 0.1

    params = prepare_params(w_linear, w_conv, w_affine, b_affine)  # f32 path
    y, out_cache = basic_block_forward(x, in_cache, params,
                                       lstride=lstride, dout=linear_dim)
    jax.block_until_ready((y, out_cache))

    y_ref, cache_ref = reference_forward(x, in_cache, w_linear, w_conv,
                                         w_affine, b_affine, lstride)
    assert y.shape == (B, T, linear_dim)
    assert out_cache.shape == in_cache.shape
    assert jnp.allclose(y, y_ref, atol=1e-5, rtol=1e-5)
    assert jnp.allclose(out_cache, cache_ref, atol=1e-5, rtol=1e-5)

    print("KERNEL_OK")
</pallas_src>

<mosaic_0001>
module attributes {stable_mosaic.version = 11 : i64} {
  func.func @kernel(%arg0: i32, %arg1: i32, %arg2: memref<1x8x128xf32, #tpu.memory_space<vmem>>, %arg3: memref<1x3x128xf32, #tpu.memory_space<vmem>>, %arg4: memref<128x128xf32, #tpu.memory_space<vmem>>, %arg5: memref<4x128xf32, #tpu.memory_space<vmem>>, %arg6: memref<128x128xf32, #tpu.memory_space<vmem>>, %arg7: memref<1x128xf32, #tpu.memory_space<vmem>>, %arg8: memref<1x8x128xf32, #tpu.memory_space<vmem>>, %arg9: memref<3x128xf32, #tpu.memory_space<vmem>>, %arg10: memref<11x128xf32, #tpu.memory_space<vmem>>) attributes {dimension_semantics = [#tpu.dimension_semantics<parallel>, #tpu.dimension_semantics<arbitrary>], iteration_bounds = array<i64: 2, 1>, scalar_prefetch = 0 : i64, scratch_operands = 2 : i64, tpu.core_type = #tpu.core_type<tc>, window_params = [{transform_indices = @transform_0, window_bounds = array<i64: 1, 8, 128>}, {transform_indices = @transform_1, window_bounds = array<i64: 1, 3, 128>}, {pipeline_mode = #tpu.pipeline_mode<synchronous>, transform_indices = @transform_2, window_bounds = array<i64: 128, 128>}, {pipeline_mode = #tpu.pipeline_mode<synchronous>, transform_indices = @transform_3, window_bounds = array<i64: 4, 128>}, {pipeline_mode = #tpu.pipeline_mode<synchronous>, transform_indices = @transform_4, window_bounds = array<i64: 128, 128>}, {pipeline_mode = #tpu.pipeline_mode<synchronous>, transform_indices = @transform_5, window_bounds = array<i64: 1, 128>}, {transform_indices = @transform_6, window_bounds = array<i64: 1, 8, 128>}]} {
    %c0_i32 = arith.constant 0 : i32
    %0 = arith.cmpi eq, %arg1, %c0_i32 : i32
    %1 = arith.extui %0 : i1 to i32
    %c0_i32_0 = arith.constant 0 : i32
    %2 = arith.cmpi ne, %1, %c0_i32_0 : i32
    scf.if %2 {
      %c0_30 = arith.constant 0 : index
      %c0_31 = arith.constant 0 : index
      %c0_32 = arith.constant 0 : index
      %43 = vector.load %arg3[%c0_30, %c0_31, %c0_32] : memref<1x3x128xf32, #tpu.memory_space<vmem>>, vector<1x3x128xf32>
      %44 = vector.shape_cast %43 : vector<1x3x128xf32> to vector<3x128xf32>
      %c0_33 = arith.constant 0 : index
      %c0_34 = arith.constant 0 : index
      %45 = vector.load %arg9[%c0_33, %c0_34] : memref<3x128xf32, #tpu.memory_space<vmem>>, vector<3x128xf32>
      tpu.vector_store %arg9[%c0_33, %c0_34], %44 {strides = array<i32>} : memref<3x128xf32, #tpu.memory_space<vmem>>, vector<3x128xf32>,
    } else {
    }
    %c0 = arith.constant 0 : index
    %c0_1 = arith.constant 0 : index
    %c0_2 = arith.constant 0 : index
    %3 = vector.load %arg2[%c0, %c0_1, %c0_2] : memref<1x8x128xf32, #tpu.memory_space<vmem>>, vector<1x8x128xf32>
    %4 = vector.shape_cast %3 : vector<1x8x128xf32> to vector<8x128xf32>
    %c0_3 = arith.constant 0 : index
    %c0_4 = arith.constant 0 : index
    %5 = vector.load %arg4[%c0_3, %c0_4] : memref<128x128xf32, #tpu.memory_space<vmem>>, vector<128x128xf32>
    %cst = arith.constant dense<0.000000e+00> : vector<8x128xf32>
    %6 = tpu.matmul %4, %5, %cst {dimension_numbers = #tpu.dot_dimension_numbers<[1], [0], [0], [1], [0, 0, 1, 1], [], []>} : vector<8x128xf32>, vector<128x128xf32>, vector<8x128xf32> -> vector<8x128xf32>
    %c0_5 = arith.constant 0 : index
    %c0_6 = arith.constant 0 : index
    %7 = vector.load %arg9[%c0_5, %c0_6] : memref<3x128xf32, #tpu.memory_space<vmem>>, vector<3x128xf32>
    %c0_7 = arith.constant 0 : index
    %c0_8 = arith.constant 0 : index
    %8 = vector.load %arg10[%c0_7, %c0_8] : memref<11x128xf32, #tpu.memory_space<vmem>>, vector<3x128xf32>
    tpu.vector_store %arg10[%c0_7, %c0_8], %7 {strides = array<i32>} : memref<11x128xf32, #tpu.memory_space<vmem>>, vector<3x128xf32>,
    %c3 = arith.constant 3 : index
    %c0_9 = arith.constant 0 : index
    %9 = vector.load %arg10[%c3, %c0_9] : memref<11x128xf32, #tpu.memory_space<vmem>>, vector<8x128xf32>
    tpu.vector_store %arg10[%c3, %c0_9], %6 {strides = array<i32>} : memref<11x128xf32, #tpu.memory_space<vmem>>, vector<8x128xf32>,
    %c8 = arith.constant 8 : index
    %c0_10 = arith.constant 0 : index
    %10 = vector.load %arg10[%c8, %c0_10] : memref<11x128xf32, #tpu.memory_space<vmem>>, vector<3x128xf32>
    %c0_11 = arith.constant 0 : index
    %c0_12 = arith.constant 0 : index
    %11 = vector.load %arg9[%c0_11, %c0_12] : memref<3x128xf32, #tpu.memory_space<vmem>>, vector<3x128xf32>
    tpu.vector_store %arg9[%c0_11, %c0_12], %10 {strides = array<i32>} : memref<3x128xf32, #tpu.memory_space<vmem>>, vector<3x128xf32>,
    %c0_13 = arith.constant 0 : index
    %c0_14 = arith.constant 0 : index
    %12 = vector.load %arg5[%c0_13, %c0_14] : memref<4x128xf32, #tpu.memory_space<vmem>>, vector<4x128xf32>
    %c0_15 = arith.constant 0 : index
    %c0_16 = arith.constant 0 : index
    %13 = vector.load %arg10[%c0_15, %c0_16] : memref<11x128xf32, #tpu.memory_space<vmem>>, vector<8x128xf32>
    %14 = vector.extract_strided_slice %12 {offsets = [0, 0], sizes = [1, 128], strides = [1, 1]} : vector<4x128xf32> to vector<1x128xf32>
    %15 = vector.broadcast %14 : vector<1x128xf32> to vector<8x128xf32>
    %16 = arith.mulf %13, %15 : vector<8x128xf32>
    %17 = arith.addf %6, %16 : vector<8x128xf32>
    %c1 = arith.constant 1 : index
    %c0_17 = arith.constant 0 : index
    %18 = vector.load %arg10[%c1, %c0_17] : memref<11x128xf32, #tpu.memory_space<vmem>>, vector<8x128xf32>
    %19 = vector.extract_strided_slice %12 {offsets = [1, 0], sizes = [1, 128], strides = [1, 1]} : vector<4x128xf32> to vector<1x128xf32>
    %20 = vector.broadcast %19 : vector<1x128xf32> to vector<8x128xf32>
    %21 = arith.mulf %18, %20 : vector<8x128xf32>
    %22 = arith.addf %17, %21 : vector<8x128xf32>
    %c2 = arith.constant 2 : index
    %c0_18 = arith.constant 0 : index
    %23 = vector.load %arg10[%c2, %c0_18] : memref<11x128xf32, #tpu.memory_space<vmem>>, vector<8x128xf32>
    %24 = vector.extract_strided_slice %12 {offsets = [2, 0], sizes = [1, 128], strides = [1, 1]} : vector<4x128xf32> to vector<1x128xf32>
    %25 = vector.broadcast %24 : vector<1x128xf32> to vector<8x128xf32>
    %26 = arith.mulf %23, %25 : vector<8x128xf32>
    %27 = arith.addf %22, %26 : vector<8x128xf32>
    %c3_19 = arith.constant 3 : index
    %c0_20 = arith.constant 0 : index
    %28 = vector.load %arg10[%c3_19, %c0_20] : memref<11x128xf32, #tpu.memory_space<vmem>>, vector<8x128xf32>
    %29 = vector.extract_strided_slice %12 {offsets = [3, 0], sizes = [1, 128], strides = [1, 1]} : vector<4x128xf32> to vector<1x128xf32>
    %30 = vector.broadcast %29 : vector<1x128xf32> to vector<8x128xf32>
    %31 = arith.mulf %28, %30 : vector<8x128xf32>
    %32 = arith.addf %27, %31 : vector<8x128xf32>
    %c0_21 = arith.constant 0 : index
    %c0_22 = arith.constant 0 : index
    %33 = vector.load %arg6[%c0_21, %c0_22] : memref<128x128xf32, #tpu.memory_space<vmem>>, vector<128x128xf32>
    %cst_23 = arith.constant dense<0.000000e+00> : vector<8x128xf32>
    %34 = tpu.matmul %32, %33, %cst_23 {dimension_numbers = #tpu.dot_dimension_numbers<[1], [0], [0], [1], [0, 0, 1, 1], [], []>} : vector<8x128xf32>, vector<128x128xf32>, vector<8x128xf32> -> vector<8x128xf32>
    %c0_24 = arith.constant 0 : index
    %c0_25 = arith.constant 0 : index
    %35 = vector.load %arg7[%c0_24, %c0_25] : memref<1x128xf32, #tpu.memory_space<vmem>>, vector<1x128xf32>
    %36 = vector.broadcast %35 : vector<1x128xf32> to vector<8x128xf32>
    %37 = arith.addf %34, %36 : vector<8x128xf32>
    %cst_26 = arith.constant 0.000000e+00 : f32
    %38 = vector.broadcast %cst_26 : f32 to vector<8x128xf32>
    %39 = arith.maximumf %37, %38 : vector<8x128xf32>
    %c0_27 = arith.constant 0 : index
    %c0_28 = arith.constant 0 : index
    %c0_29 = arith.constant 0 : index
    %40 = vector.load %arg8[%c0_27, %c0_28, %c0_29] : memref<1x8x128xf32, #tpu.memory_space<vmem>>, vector<1x8x128xf32>
    %41 = vector.shape_cast %40 : vector<1x8x128xf32> to vector<8x128xf32>
    %42 = vector.shape_cast %39 : vector<8x128xf32> to vector<1x8x128xf32>
    tpu.vector_store %arg8[%c0_27, %c0_28, %c0_29], %42 {strides = array<i32>} : memref<1x8x128xf32, #tpu.memory_space<vmem>>, vector<1x8x128xf32>,
    return
  }
  func.func @transform_0(%arg0: i32, %arg1: i32) -> (i32, i32, i32) {
    %c0_i32 = arith.constant 0 : i32
    %c0_i32_0 = arith.constant 0 : i32
    return %arg0, %arg1, %c0_i32 : i32, i32, i32
  }
  func.func @transform_1(%arg0: i32, %arg1: i32) -> (i32, i32, i32) {
    %c0_i32 = arith.constant 0 : i32
    %c0_i32_0 = arith.constant 0 : i32
    %c0_i32_1 = arith.constant 0 : i32
    return %arg0, %c0_i32, %c0_i32_0 : i32, i32, i32
  }
  func.func @transform_2(%arg0: i32, %arg1: i32) -> (i32, i32) {
    %c0_i32 = arith.constant 0 : i32
    %c0_i32_0 = arith.constant 0 : i32
    %c0_i32_1 = arith.constant 0 : i32
    return %c0_i32, %c0_i32_0 : i32, i32
  }
  func.func @transform_3(%arg0: i32, %arg1: i32) -> (i32, i32) {
    %c0_i32 = arith.constant 0 : i32
    %c0_i32_0 = arith.constant 0 : i32
    %c0_i32_1 = arith.constant 0 : i32
    return %c0_i32, %c0_i32_0 : i32, i32
  }
  func.func @transform_4(%arg0: i32, %arg1: i32) -> (i32, i32) {
    %c0_i32 = arith.constant 0 : i32
    %c0_i32_0 = arith.constant 0 : i32
    %c0_i32_1 = arith.constant 0 : i32
    return %c0_i32, %c0_i32_0 : i32, i32
  }
  func.func @transform_5(%arg0: i32, %arg1: i32) -> (i32, i32) {
    %c0_i32 = arith.constant 0 : i32
    %c0_i32_0 = arith.constant 0 : i32
    %c0_i32_1 = arith.constant 0 : i32
    return %c0_i32, %c0_i32_0 : i32, i32
  }
  func.func @transform_6(%arg0: i32, %arg1: i32) -> (i32, i32, i32) {
    %c0_i32 = arith.constant 0 : i32
    %c0_i32_0 = arith.constant 0 : i32
    return %arg0, %arg1, %c0_i32 : i32, i32, i32
  }
}

</mosaic_0001>

<bundles_post_ra>
// kernel: basic_block_forward.1
= control target key start
LH: loop header
LB: loop body
LE: loop exit
PB: predicated region body
PF: predicated region fallthrough
CT: control target
= control target key end

     0   :  { %11 = vsyncpa [#allocation5], 0  ;;  %s972_s0 = inlined_call_operand.vmem [shape: f32[2,8,128], index: 0, kind: input, shape index: {}]   ;;  %s973_s1 = inlined_call_operand.vmem [shape: f32[2,3,128], index: 1, kind: input, shape index: {}]   ;;  %s974_s2 = inlined_call_operand.hbm [shape: f32[128,128], index: 2, kind: input, shape index: {}]   ;;  %s975_s3 = inlined_call_operand.vmem [shape: f32[4,128], index: 3, kind: input, shape index: {}]   ;;  %s976_s4 = inlined_call_operand.hbm [shape: f32[128,128], index: 4, kind: input, shape index: {}]   ;;  %s977_s5 = inlined_call_operand.vmem [shape: f32[1,128], index: 5, kind: input, shape index: {}]   ;;  %s978_s6 = inlined_call_operand.hbm [shape: f32[2,8,128], index: 6, kind: output, shape index: {}]  }
   0x1   :  { %12 = vsyncpa [#allocation8], 0 }
   0x2   :  { %13 = vsyncpa [#allocation6], 0 }
   0x3   :  { %15 = vsyncpa [#allocation6 + $0x1], 0  ;;  %s834_s21 = smov 0   ;;  %s836_s22 = smov 0  }
   0x4   :  { %s838_s23 = smov 0   ;;  %s840_s24 = smov 0  }
   0x5   :  { %s842_s25 = smov 0   ;;  %s844_s26 = smov 0  }
   0x6 LB: > { %s552_s27 = sadd.s32 4294967295, %s793_s26   ;;  %s553_s28 = sadd.s32 4294967294, %s793_s26   ;;  %s793_s26 = sphi %s844_s26, %s21_s26   ;;  %s789_s25 = sphi %s842_s25, %s987_s25   ;;  %s785_s24 = sphi %s840_s24, %s986_s24   ;;  %s781_s23 = sphi %s838_s23, %s985_s23   ;;  %s777_s22 = sphi %s836_s22, %s984_s22   ;;  %s773_s21 = sphi %s834_s21, %s983_s21  }
   0x7   : > { %s33_s29 = sadd.s32 1, %s789_s25  ;;  %s180_s30 = sadd.s32 1, %s781_s23 }
   0x8   : > { %p35_p0 = scmp.ge.s32.totalorder %s33_s29, 2  ;;  %p190_p1 = scmp.ne.s32.totalorder %s781_s23, %s777_s22 }
   0x9   : > { %p191_p2 = scmp.eq.s32.totalorder %s552_s27, 1  ;;  %p196_p3 = scmp.ne.s32.totalorder %s777_s22, %s773_s21 }
   0xa   : > { %s989_s29 = smov (%p35_p0, %s33_s29), 0  ;;  %p197_p5 = scmp.eq.s32.totalorder %s553_s28, 1 }
   0xb   : > { %p874_p4 = por %p191_p2, %p190_p1  ;;  %s175_s8 = ssub.s32 %s789_s25, %s989_s29 }
   0xc   : > { %p554_p6 = scmp.ge.s32.totalorder %s793_s26, 1  ;;  %p178_p7 = scmp.eq.s32.totalorder %s175_s8, 0 }
   0xd   : > { %p881_p8 = por %p197_p5, %p196_p3  ;;  %p204_p9 = scmp.lt.s32.totalorder %s793_s26, 3 }
   0xe   : > { %s887_s10 = scalar_select %p178_p7, %s781_s23, %s180_s30  }
   0xf   : > { %p889_p10 = pnand %p554_p6, %p204_p9  ;;  %p893_p11 = scmp.eq.s32.totalorder %s552_s27, 0 }
  0x10   : > { %s215_s15 = sshll.u32 %s974_s2, 4  ;;  %s795_s16 = smov [#allocation4]   ;;  %s216_s15 = int_to_ptr.hbm [resolvable:$true] %s215_s15 }
  0x11   : > { %p578_p12 = pneg %p889_p10  ;;  %s217_s17 = sshll.u32 %s795_s16, 4  ;;  %s218_s17 = int_to_ptr.vmem [resolvable:$true] %s217_s17 }
  0x12   : > { %s232_s20 = sshll.u32 %s976_s4, 4  ;;  %s796_s27 = smov 128   ;;  %s233_s20 = int_to_ptr.hbm [resolvable:$true] %s232_s20 }
  0x13   : > { %p579_p13 = pnand %p893_p11, %p578_p12  ;;  %s797_s28 = smov 8  }
  0x14   : > { %s798_s30 = smov [#allocation7]   ;;  %270 = sbr.rel (%p889_p10) target bundleno = 337 (0x151), region = 44 }
  0x15   : > { %581 = dma.hbm_to_vmem [thread:$0]  (!%p579_p13), %s216_s15, 2048, %s218_s17, [#allocation5], %s796_s27, %s796_s27, %s797_s28  }
  0x16   : > { %s234_s8 = sshll.u32 %s798_s30, 4  ;;  %s235_s8 = int_to_ptr.vmem [resolvable:$true] %s234_s8 }
  0x17   : > { %584 = dma.hbm_to_vmem [thread:$0]  (!%p579_p13), %s233_s20, 2048, %s235_s8, [#allocation8], %s796_s27, %s796_s27, %s797_s28  }
  0x19   : > { %760 = dma.done.wait (%p893_p11), [#allocation5], 2048  }
  0x1a   : > { %762 = vsyncadd (%p893_p11), [#allocation5], 4294965248 }
  0x1b   : > { %764 = dma.done.wait (%p893_p11), [#allocation8], 2048  }
  0x1c   : > { %766 = vsyncadd (%p893_p11), [#allocation8], 4294965248  ;;  %p312_p0 = scmp.lt.s32.totalorder %s785_s24, 1  ;;  %v345_v0 = vld [vmem:[#allocation4 + $0x78] sm:$0xff]  ;;  %v344_v1 = vld [vmem:[#allocation4 + $0x70] sm:$0xff]  ;;  %s309_s28 = sand.u32 1, %s777_s22  }
  0x1d   : > { %346 = vmatpush.msra.mxu0 %v345_v0  ;;  %v343_v2 = vld [vmem:[#allocation4 + $0x68] sm:$0xff]  ;;  %v342_v3 = vld [vmem:[#allocation4 + $0x60] sm:$0xff]  ;;  %v341_v5 = vld [vmem:[#allocation4 + $0x58] sm:$0xff]  ;;  %s561_s30 = sshll.u32 %s309_s28, 3  ;;  %s565_s8 = sshll.u32 %s785_s24, 3 }
  0x1e   : > { %s919_s13 = scalar_select %p312_p0, %s785_s24, 1  ;;  %v403_v6 = vld [vmem:[#allocation7 + $0x78] sm:$0xff]  ;;  %v402_v7 = vld [vmem:[#allocation7 + $0x70] sm:$0xff]  ;;  %v401_v9 = vld [vmem:[#allocation7 + $0x68] sm:$0xff] }
  0x1f   : > { %347 = vmatpush.msra.mxu0 %v344_v1  ;;  %408 = vmatpush.msra.mxu1 %v403_v6  ;;  %v340_v8 = vld [vmem:[#allocation4 + $0x50] sm:$0xff]  ;;  %v339_v10 = vld [vmem:[#allocation4 + $0x48] sm:$0xff]  ;;  %v400_v11 = vld [vmem:[#allocation7 + $0x60] sm:$0xff] }
  0x20   : > { %s563_s11 = sshll.u32 %s919_s13, 2  ;;  %v338_v12 = vld [vmem:[#allocation4 + $0x40] sm:$0xff]  ;;  %v399_v13 = vld [vmem:[#allocation7 + $0x58] sm:$0xff]  ;;  %v398_v15 = vld [vmem:[#allocation7 + $0x50] sm:$0xff]  ;;  %s562_s12 = sshll.u32 %s919_s13, 3 }
  0x21   : > { %s322_s16 = scalar_lea.vmem %s973_s1, %s563_s11  ;;  %348 = vmatpush.msra.mxu0 %v343_v2  ;;  %409 = vmatpush.msra.mxu1 %v402_v7  ;;  %v337_v14 = vld [vmem:[#allocation4 + $0x38] sm:$0xff]  ;;  %v336_v16 = vld [vmem:[#allocation4 + $0x30] sm:$0xff]  ;;  %v335_v17 = vld [vmem:[#allocation4 + $0x28] sm:$0xff]  ;;  %s318_s19 = scalar_lea.vmem %s972_s0, %s562_s12 }
  0x22   : > { %v327_v4 = vld [vmem:[%s322_s16] sm:$0x7]  ;;  %v334_v18 = vld [vmem:[#allocation4 + $0x20] sm:$0xff]  ;;  %v333_v19 = vld [vmem:[#allocation4 + $0x18] sm:$0xff]  ;;  %s442_s16 = scalar_lea.hbm %s978_s6, %s565_s8  ;;  %s311_s12 = scalar_lea.vmem [#allocation9], %s561_s30 }
  0x23   : > { %328 = vst [vmem:[#allocation2] sm:$0x7] %v327_v4  ;;  %349 = vmatpush.msra.mxu0 %v342_v3  ;;  %410 = vmatpush.msra.mxu1 %v401_v9  ;;  %v332_v20 = vld [vmem:[#allocation4 + $0x10] sm:$0xff]  ;;  %v331_v21 = vld [vmem:[#allocation4 + $0x8] sm:$0xff]  ;;  %v330_v22 = vld [vmem:[#allocation4] sm:$0xff]  ;;  %s444_s17 = sshll.u32 %s311_s12, 4  ;;  %s445_s17 = int_to_ptr.vmem [resolvable:$true] %s444_s17 }
  0x24   : > { %v329_v23 = vld [vmem:[%s318_s19] sm:$0xff]  ;;  %v396_v26 = vld [vmem:[#allocation7 + $0x40] sm:$0xff]  ;;  %v395_v27 = vld [vmem:[#allocation7 + $0x38] sm:$0xff]  ;;  %s446_s18 = sshll.u32 %s442_s16, 4  ;;  %s431_s19 = scalar_lea.sflag [#allocation6], %s309_s28  ;;  %s447_s18 = int_to_ptr.hbm [resolvable:$true] %s446_s18 }
  0x25   : > { %350 = vmatpush.msra.mxu0 %v341_v5  ;;  %411 = vmatpush.msra.mxu1 %v400_v11  ;;  %v397_v24 = vld [vmem:[#allocation7 + $0x48] sm:$0xff]  ;;  %v394_v28 = vld [vmem:[#allocation7 + $0x30] sm:$0xff]  ;;  %v392_v30 = vld [vmem:[#allocation7 + $0x20] sm:$0xff]  ;;  %s721_s24 = sshra.s32 %s447_s18, 4  ;;  %s727_s8 = scalar_lea.hbm %s978_s6, 16  ;;  %s722_s24 = int_to_ptr.hbm [resolvable:$true] %s721_s24 }
  0x26   : > { %v393_v29 = vld [vmem:[#allocation7 + $0x28] sm:$0xff]  ;;  %v391_v31 = vld [vmem:[#allocation7 + $0x18] sm:$0xff]  ;;  %v390_v32 = vld [vmem:[#allocation7 + $0x10] sm:$0xff]  ;;  %s723_s20 = scalar_lea.hbm %s722_s24, 8  ;;  %p728_p5 = scmp.lt.s32.totalorder %s722_s24, %s978_s6 }
  0x27   : > { %351 = vmatpush.msra.mxu0 %v340_v8  ;;  %412 = vmatpush.msra.mxu1 %v399_v13  ;;  %v389_v33 = vld [vmem:[#allocation7 + $0x8] sm:$0xff]  ;;  %v388_v34 = vld [vmem:[#allocation7] sm:$0xff]  ;;  %p724_p1 = scmp.ne.s32.totalorder %s722_s24, %s723_s20  ;;  %p729_p6 = scmp.lt.s32.totalorder %s727_s8, %s723_s20 }
  0x28   : > { %v371_v36 = vld [vmem:[%s975_s3] sm:$0xf] }
  0x29   : > { %352 = vmatpush.msra.mxu0 %v339_v10  ;;  %413 = vmatpush.msra.mxu1 %v398_v15  ;;  %v373_v37 = vperm.slane %v371_v36, 0  ;;  %v377_v38 = vperm.slane %v371_v36, 1  ;;  %v381_v43 = vperm.slane %v371_v36, 2  ;;  %v385_v47 = vperm.slane %v371_v36, 3  ;;  %v646_v53 = vld [vmem:[%s977_s5] ss:$0 sm:$0xff]  ;;  %p725_p2 = pnand %p724_p1, %p874_p4  ;;  %p730_p7 = por %p729_p6, %p728_p5 }
  0x2a   : > { %v366_v25 = vld [vmem:[#allocation2] sm:$0x7] }
  0x2b   : > { %353 = vmatpush.msra.mxu0 %v338_v12  ;;  %414 = vmatpush.msra.mxu1 %v397_v24  ;;  %367 = vst [vmem:[#allocation3] sm:$0x7] %v366_v25  ;;  %p726_p3 = pneg %p725_p2 }
  0x2d   : > { %354 = vmatpush.msra.mxu0 %v337_v14  ;;  %415 = vmatpush.msra.mxu1 %v396_v26  ;;  %p731_p9 = pnand %p730_p7, %p726_p3 }
  0x2f   : > { %355 = vmatpush.msra.mxu0 %v336_v16  ;;  %416 = vmatpush.msra.mxu1 %v395_v27 }
  0x31   : > { %356 = vmatpush.msra.mxu0 %v335_v17  ;;  %417 = vmatpush.msra.mxu1 %v394_v28 }
  0x33   : > { %357 = vmatpush.msra.mxu0 %v334_v18  ;;  %418 = vmatpush.msra.mxu1 %v393_v29 }
  0x35   : > { %358 = vmatpush.msra.mxu0 %v333_v19  ;;  %419 = vmatpush.msra.mxu1 %v392_v30 }
  0x37   : > { %359 = vmatpush.msra.mxu0 %v332_v20  ;;  %420 = vmatpush.msra.mxu1 %v391_v31 }
  0x39   : > { %360 = vmatpush.msra.mxu0 %v331_v21  ;;  %421 = vmatpush.msra.mxu1 %v390_v32 }
  0x3b   : > { %361 = vmatpush.msra.mxu0 %v330_v22  ;;  %422 = vmatpush.msra.mxu1 %v389_v33 }
  0x3c   : > { %362 = vmatmul.f32.vlgmr.msra.gmra.mxu0 %v329_v23 }
  0x3d   : > { %423 = vmatpush.msra.mxu1 %v388_v34 }
  0xb9   : > { %v363_v35 = vpop.f32.mrf.mxu0 }
  0xba   : > { %368 = vst [vmem:[#allocation3 + $0x3] sm:$0xff] %v363_v35  ;;  %v386_v51 = vmul.f32 %v385_v47, %v363_v35 }
  0xc1   : > { %v369_v39 = vld [vmem:[#allocation3 + $0x8] sm:$0x7]  ;;  %v372_v40 = vld [vmem:[#allocation3] sm:$0xff] }
  0xc2   : > { %v376_v41 = vld [vmem:[#allocation3 + $0x1] sm:$0xff]  ;;  %370 = vst [vmem:[#allocation2] sm:$0x7] %v369_v39  ;;  %v374_v42 = vmul.f32 %v373_v37, %v372_v40 }
  0xc3   : > { %v380_v44 = vld [vmem:[#allocation3 + $0x2] sm:$0xff]  ;;  %v378_v46 = vmul.f32 %v377_v38, %v376_v41 }
  0xc4   : > { %v375_v45 = vadd.f32 %v374_v42, %v363_v35  ;;  %v382_v49 = vmul.f32 %v381_v43, %v380_v44 }
  0xc6   : > { %v379_v48 = vadd.f32 %v378_v46, %v375_v45 }
  0xc8   : > { %v383_v50 = vadd.f32 %v382_v49, %v379_v48 }
  0xca   : > { %v387_v52 = vadd.f32 %v386_v51, %v383_v50 }
  0xcc   : > { %424 = vmatmul.f32.vlgmr.msra.gmra.mxu1 %v387_v52 }
 0x149   : > { %v425_v54 = vpop.f32.mrf.mxu1 }
 0x14a   : > { %v426_v55 = vadd.f32 %v646_v53, %v425_v54 }
 0x14c   : > { %v428_v56 = vmax.f32 %v426_v55, 0.0 }
 0x14e   : > { %429 = vst [vmem:[%s311_s12] sm:$0xff] %v428_v56 }
 0x14f   : > { %734 = shalt.err (!%p731_p9)
}
 0x150   : > { %576 = dma.vmem_to_hbm [thread:$0]  (%p874_p4), %s445_s17, 128, %s447_s18, %s431_s19  }
 0x151 PF: > { %p593_p10 = scmp.ge.s32.totalorder %s793_s26, 2  ;;  %s458_s28 = sand.u32 1, %s773_s21  }
 0x152   : > { %s459_s14 = scalar_lea.sflag [#allocation6], %s458_s28 }
 0x153   : > { %p586_p11 = pnand %p593_p10, %p881_p8 }
 0x155   : > { %p587_p12 = pneg %p586_p11 }
 0x157   : > { %768 = dma.done.wait (%p587_p12), %s459_s14, 128  }
 0x158   : > { %770 = vsyncadd (%p587_p12), %s459_s14, 4294967168  ;;  %s21_s26 = sadd.s32 1, %s793_s26   ;;  %s983_s21 = smov %s777_s22 }
 0x159   : > { %p18_p13 = scmp.ge.s32.totalorder %s21_s26, 4   ;;  %s984_s22 = smov %s781_s23 }
 0x15a   : > { %s985_s23 = smov %s887_s10  ;;  %s986_s24 = smov %s789_s25 }
 0x15b   : > { %s987_s25 = smov %s989_s29  ;;  %20 = sbr.rel (!%p18_p13) target bundleno = 6 (0x6), region = 95 }
 0x160   :  { %465 = vsyncpa [#allocation5], 1 }
 0x161   :  { %467 = vsyncpa [#allocation5 + $0x1], 1 }
 0x162   :  { %468 = vsyncpa [#allocation8], 1 }
 0x163   :  { %469 = vsyncpa [#allocation6], 1 }
 0x164   :  { %471 = vsyncpa [#allocation6 + $0x1], 1 }

</bundles_post_ra>
